<compile_context>
chip_gen: v7x
topology: tpu7x:2x2x1
jax: 0.10.0
libtpu: 0.0.40
codegen_flags: <defaults>
</compile_context>

<pallas_src>
import functools

import jax
import jax.numpy as jnp
from jax.experimental import pallas as pl
from jax.experimental.pallas import tpu as pltpu


def out_conv_kernel(x_ref, w_ref, b_ref, o_ref, zpad_ref, *, H, W, PAD):
    """One batch image per grid step.

    x_ref:    (Cin, H*W)          VMEM f32  - input image, pixels on the lane axis
    w_ref:    (Cout, Cin)         SMEM f32  - 1x1 conv weight (read as scalars)
    b_ref:    (Cout,)             SMEM f32  - 1x1 conv bias   (read as scalars)
    o_ref:    (Cout, H*W)         VMEM f32  - softmax output
    zpad_ref: (Cout, H*W + 2*PAD) VMEM f32  - scratch: z with a zeroed halo of PAD lanes
                                              on each side (PAD >= W, lane-aligned)
    """
    HW = H * W
    Cin = x_ref.shape[0]
    Cout = o_ref.shape[0]

    # Zero the halo regions (lane-aligned, full-width stores).
    zero_pad = jnp.zeros((Cout, PAD), jnp.float32)
    zpad_ref[:, 0:PAD] = zero_pad
    zpad_ref[:, PAD + HW:2 * PAD + HW] = zero_pad

    # 1x1 conv: unrolled per-channel VPU multiply-accumulate, weights/bias from SMEM scalars.
    xs = [x_ref[ci:ci + 1, :] for ci in range(Cin)]            # Cin x (1, HW)
    for co in range(Cout):
        z = xs[0] * w_ref[co, 0] + b_ref[co]
        for ci in range(1, Cin):
            z = z + xs[ci] * w_ref[co, ci]
        zpad_ref[co:co + 1, PAD:PAD + HW] = z                  # lane-aligned store at offset PAD

    # Fixed depthwise 3x3 sharpen [[0,-1,0],[-1,5,-1],[0,-1,0]] with zero padding=1:
    #   y[h,w] = 5*z[h,w] - z[h-1,w] - z[h+1,w] - z[h,w-1] - z[h,w+1]
    # Up/down shifts get their zero boundary for free from the halo; left/right shifts cross
    # rows in flattened space at column 0 / W-1, so they need a column mask.
    idx = jax.lax.broadcasted_iota(jnp.int32, (1, HW), 1)
    col = idx % W
    has_left = (col > 0).astype(jnp.float32)
    has_right = (col < W - 1).astype(jnp.float32)

    z = zpad_ref[:, PAD:PAD + HW]                              # (Cout, HW)
    up = zpad_ref[:, PAD - W:PAD - W + HW]                     # z[h-1, w]  (0 at top row)
    down = zpad_ref[:, PAD + W:PAD + W + HW]                   # z[h+1, w]  (0 at bottom row)
    left = zpad_ref[:, PAD - 1:PAD - 1 + HW] * has_left        # z[h, w-1]  (0 at column 0)
    right = zpad_ref[:, PAD + 1:PAD + 1 + HW] * has_right      # z[h, w+1]  (0 at column W-1)
    y = 5.0 * z - up - down - left - right

    # Softmax over channels (sublane axis, only Cout=3 rows); exp + reciprocal go to the EUP.
    m = jnp.max(y, axis=0, keepdims=True)
    e = jnp.exp(y - m)
    s = jnp.sum(e, axis=0, keepdims=True)
    o_ref[...] = e * pl.reciprocal(s, approx=True)             # single lane-dense slab store


@jax.jit
def out_conv(x_nchw, conv_w, conv_b):
    """x_nchw: (N, Cin, H, W), conv_w: (Cout, Cin, 1, 1), conv_b: (Cout,) -> (N, Cout, H, W)."""
    N, Cin, H, W = x_nchw.shape
    Cout = conv_w.shape[0]
    HW = H * W
    PAD = ((W + 127) // 128) * 128   # lane-aligned halo width (>= one image row)

    x = x_nchw.reshape(N, Cin, HW).astype(jnp.float32)   # free reshape, no transpose
    w = conv_w[:, :, 0, 0].astype(jnp.float32)           # (Cout, Cin) -> SMEM scalars
    b = conv_b.astype(jnp.float32)                       # (Cout,)     -> SMEM scalars

    out = pl.pallas_call(
        functools.partial(out_conv_kernel, H=H, W=W, PAD=PAD),
        out_shape=jax.ShapeDtypeStruct((N, Cout, HW), jnp.float32),
        grid_spec=pltpu.PrefetchScalarGridSpec(
            num_scalar_prefetch=0,
            grid=(N,),
            in_specs=[
                pl.BlockSpec((None, Cin, HW), lambda n: (n, 0, 0)),
                pl.BlockSpec(memory_space=pltpu.MemorySpace.SMEM),
                pl.BlockSpec(memory_space=pltpu.MemorySpace.SMEM),
            ],
            out_specs=pl.BlockSpec((None, Cout, HW), lambda n: (n, 0, 0)),
            scratch_shapes=[pltpu.VMEM((Cout, HW + 2 * PAD), jnp.float32)],
        ),
        compiler_params=pltpu.CompilerParams(dimension_semantics=("parallel",)),
    )(x, w, b)

    return out.reshape(N, Cout, H, W)   # free reshape back to NCHW


def _reference(x_nchw, conv_w, conv_b):
    """Pure-JAX reference of the same forward (for a sanity check)."""
    z = jnp.einsum('nchw,oc->nohw', x_nchw, conv_w[:, :, 0, 0]) + conv_b[None, :, None, None]
    zp = jnp.pad(z, ((0, 0), (0, 0), (1, 1), (1, 1)))
    y = (5.0 * z
         - zp[:, :, :-2, 1:-1] - zp[:, :, 2:, 1:-1]
         - zp[:, :, 1:-1, :-2] - zp[:, :, 1:-1, 2:])
    y = y - jnp.max(y, axis=1, keepdims=True)
    e = jnp.exp(y)
    return e / jnp.sum(e, axis=1, keepdims=True)


if __name__ == "__main__":
    N, Cin, Cout, H, W = 2, 4, 3, 16, 16

    key = jax.random.PRNGKey(0)
    kx, kw, kb = jax.random.split(key, 3)
    x = jax.random.normal(kx, (N, Cin, H, W), dtype=jnp.float32)
    # nn.Conv2d(in_channels, out_channels, kernel_size=1): weight (Cout, Cin, 1, 1), bias (Cout,)
    conv_w = jax.random.normal(kw, (Cout, Cin, 1, 1), dtype=jnp.float32) * 0.1
    conv_b = jax.random.normal(kb, (Cout,), dtype=jnp.float32) * 0.1

    out = jax.block_until_ready(out_conv(x, conv_w, conv_b))
    ref = _reference(x, conv_w, conv_b)

    assert out.shape == (N, Cout, H, W)
    # Tolerance accounts for the approximate EUP reciprocal in the softmax denominator.
    assert jnp.allclose(out, ref, atol=5e-3, rtol=5e-3), float(jnp.max(jnp.abs(out - ref)))

    print("KERNEL_OK")
</pallas_src>

<mosaic_0001>
module attributes {stable_mosaic.version = 11 : i64} {
  func.func @out_conv_kernel(%arg0: i32, %arg1: memref<1x4x256xf32, #tpu.memory_space<vmem>>, %arg2: memref<3x4xf32, #tpu.memory_space<smem>>, %arg3: memref<3xf32, #tpu.memory_space<smem>>, %arg4: memref<1x3x256xf32, #tpu.memory_space<vmem>>, %arg5: memref<3x512xf32, #tpu.memory_space<vmem>>) attributes {dimension_semantics = [#tpu.dimension_semantics<parallel>], iteration_bounds = array<i64: 2>, scalar_prefetch = 0 : i64, scratch_operands = 1 : i64, tpu.core_type = #tpu.core_type<tc>, window_params = [{transform_indices = @transform_0, window_bounds = array<i64: 1, 4, 256>}, {transform_indices = @transform_1, window_bounds = array<i64: 3, 4>}, {transform_indices = @transform_2, window_bounds = array<i64: 3>}, {transform_indices = @transform_3, window_bounds = array<i64: 1, 3, 256>}]} {
    %cst = arith.constant 0.000000e+00 : f32
    %0 = vector.broadcast %cst : f32 to vector<3x128xf32>
    %c0 = arith.constant 0 : index
    %c0_0 = arith.constant 0 : index
    %1 = vector.load %arg5[%c0, %c0_0] : memref<3x512xf32, #tpu.memory_space<vmem>>, vector<3x128xf32>
    tpu.vector_store %arg5[%c0, %c0_0], %0 {strides = array<i32>} : memref<3x512xf32, #tpu.memory_space<vmem>>, vector<3x128xf32>,
    %c0_1 = arith.constant 0 : index
    %c384 = arith.constant 384 : index
    %2 = vector.load %arg5[%c0_1, %c384] : memref<3x512xf32, #tpu.memory_space<vmem>>, vector<3x128xf32>
    tpu.vector_store %arg5[%c0_1, %c384], %0 {strides = array<i32>} : memref<3x512xf32, #tpu.memory_space<vmem>>, vector<3x128xf32>,
    %c0_2 = arith.constant 0 : index
    %c0_3 = arith.constant 0 : index
    %c0_4 = arith.constant 0 : index
    %3 = vector.load %arg1[%c0_2, %c0_3, %c0_4] : memref<1x4x256xf32, #tpu.memory_space<vmem>>, vector<1x1x256xf32>
    %4 = vector.shape_cast %3 : vector<1x1x256xf32> to vector<1x256xf32>
    %c0_5 = arith.constant 0 : index
    %c1 = arith.constant 1 : index
    %c0_6 = arith.constant 0 : index
    %5 = vector.load %arg1[%c0_5, %c1, %c0_6] : memref<1x4x256xf32, #tpu.memory_space<vmem>>, vector<1x1x256xf32>
    %6 = vector.shape_cast %5 : vector<1x1x256xf32> to vector<1x256xf32>
    %c0_7 = arith.constant 0 : index
    %c2 = arith.constant 2 : index
    %c0_8 = arith.constant 0 : index
    %7 = vector.load %arg1[%c0_7, %c2, %c0_8] : memref<1x4x256xf32, #tpu.memory_space<vmem>>, vector<1x1x256xf32>
    %8 = vector.shape_cast %7 : vector<1x1x256xf32> to vector<1x256xf32>
    %c0_9 = arith.constant 0 : index
    %c3 = arith.constant 3 : index
    %c0_10 = arith.constant 0 : index
    %9 = vector.load %arg1[%c0_9, %c3, %c0_10] : memref<1x4x256xf32, #tpu.memory_space<vmem>>, vector<1x1x256xf32>
    %10 = vector.shape_cast %9 : vector<1x1x256xf32> to vector<1x256xf32>
    %c0_11 = arith.constant 0 : index
    %c0_12 = arith.constant 0 : index
    %11 = memref.load %arg2[%c0_11, %c0_12] : memref<3x4xf32, #tpu.memory_space<smem>>
    %12 = vector.broadcast %11 : f32 to vector<1x256xf32>
    %13 = arith.mulf %4, %12 : vector<1x256xf32>
    %c0_13 = arith.constant 0 : index
    %14 = memref.load %arg3[%c0_13] : memref<3xf32, #tpu.memory_space<smem>>
    %15 = vector.broadcast %14 : f32 to vector<1x256xf32>
    %16 = arith.addf %13, %15 : vector<1x256xf32>
    %c0_14 = arith.constant 0 : index
    %c1_15 = arith.constant 1 : index
    %17 = memref.load %arg2[%c0_14, %c1_15] : memref<3x4xf32, #tpu.memory_space<smem>>
    %18 = vector.broadcast %17 : f32 to vector<1x256xf32>
    %19 = arith.mulf %6, %18 : vector<1x256xf32>
    %20 = arith.addf %16, %19 : vector<1x256xf32>
    %c0_16 = arith.constant 0 : index
    %c2_17 = arith.constant 2 : index
    %21 = memref.load %arg2[%c0_16, %c2_17] : memref<3x4xf32, #tpu.memory_space<smem>>
    %22 = vector.broadcast %21 : f32 to vector<1x256xf32>
    %23 = arith.mulf %8, %22 : vector<1x256xf32>
    %24 = arith.addf %20, %23 : vector<1x256xf32>
    %c0_18 = arith.constant 0 : index
    %c3_19 = arith.constant 3 : index
    %25 = memref.load %arg2[%c0_18, %c3_19] : memref<3x4xf32, #tpu.memory_space<smem>>
    %26 = vector.broadcast %25 : f32 to vector<1x256xf32>
    %27 = arith.mulf %10, %26 : vector<1x256xf32>
    %28 = arith.addf %24, %27 : vector<1x256xf32>
    %c0_20 = arith.constant 0 : index
    %c128 = arith.constant 128 : index
    %29 = vector.load %arg5[%c0_20, %c128] : memref<3x512xf32, #tpu.memory_space<vmem>>, vector<1x256xf32>
    tpu.vector_store %arg5[%c0_20, %c128], %28 {strides = array<i32>} : memref<3x512xf32, #tpu.memory_space<vmem>>, vector<1x256xf32>,
    %c1_21 = arith.constant 1 : index
    %c0_22 = arith.constant 0 : index
    %30 = memref.load %arg2[%c1_21, %c0_22] : memref<3x4xf32, #tpu.memory_space<smem>>
    %31 = vector.broadcast %30 : f32 to vector<1x256xf32>
    %32 = arith.mulf %4, %31 : vector<1x256xf32>
    %c1_23 = arith.constant 1 : index
    %33 = memref.load %arg3[%c1_23] : memref<3xf32, #tpu.memory_space<smem>>
    %34 = vector.broadcast %33 : f32 to vector<1x256xf32>
    %35 = arith.addf %32, %34 : vector<1x256xf32>
    %c1_24 = arith.constant 1 : index
    %c1_25 = arith.constant 1 : index
    %36 = memref.load %arg2[%c1_24, %c1_25] : memref<3x4xf32, #tpu.memory_space<smem>>
    %37 = vector.broadcast %36 : f32 to vector<1x256xf32>
    %38 = arith.mulf %6, %37 : vector<1x256xf32>
    %39 = arith.addf %35, %38 : vector<1x256xf32>
    %c1_26 = arith.constant 1 : index
    %c2_27 = arith.constant 2 : index
    %40 = memref.load %arg2[%c1_26, %c2_27] : memref<3x4xf32, #tpu.memory_space<smem>>
    %41 = vector.broadcast %40 : f32 to vector<1x256xf32>
    %42 = arith.mulf %8, %41 : vector<1x256xf32>
    %43 = arith.addf %39, %42 : vector<1x256xf32>
    %c1_28 = arith.constant 1 : index
    %c3_29 = arith.constant 3 : index
    %44 = memref.load %arg2[%c1_28, %c3_29] : memref<3x4xf32, #tpu.memory_space<smem>>
    %45 = vector.broadcast %44 : f32 to vector<1x256xf32>
    %46 = arith.mulf %10, %45 : vector<1x256xf32>
    %47 = arith.addf %43, %46 : vector<1x256xf32>
    %c1_30 = arith.constant 1 : index
    %c128_31 = arith.constant 128 : index
    %48 = vector.load %arg5[%c1_30, %c128_31] : memref<3x512xf32, #tpu.memory_space<vmem>>, vector<1x256xf32>
    tpu.vector_store %arg5[%c1_30, %c128_31], %47 {strides = array<i32>} : memref<3x512xf32, #tpu.memory_space<vmem>>, vector<1x256xf32>,
    %c2_32 = arith.constant 2 : index
    %c0_33 = arith.constant 0 : index
    %49 = memref.load %arg2[%c2_32, %c0_33] : memref<3x4xf32, #tpu.memory_space<smem>>
    %50 = vector.broadcast %49 : f32 to vector<1x256xf32>
    %51 = arith.mulf %4, %50 : vector<1x256xf32>
    %c2_34 = arith.constant 2 : index
    %52 = memref.load %arg3[%c2_34] : memref<3xf32, #tpu.memory_space<smem>>
    %53 = vector.broadcast %52 : f32 to vector<1x256xf32>
    %54 = arith.addf %51, %53 : vector<1x256xf32>
    %c2_35 = arith.constant 2 : index
    %c1_36 = arith.constant 1 : index
    %55 = memref.load %arg2[%c2_35, %c1_36] : memref<3x4xf32, #tpu.memory_space<smem>>
    %56 = vector.broadcast %55 : f32 to vector<1x256xf32>
    %57 = arith.mulf %6, %56 : vector<1x256xf32>
    %58 = arith.addf %54, %57 : vector<1x256xf32>
    %c2_37 = arith.constant 2 : index
    %c2_38 = arith.constant 2 : index
    %59 = memref.load %arg2[%c2_37, %c2_38] : memref<3x4xf32, #tpu.memory_space<smem>>
    %60 = vector.broadcast %59 : f32 to vector<1x256xf32>
    %61 = arith.mulf %8, %60 : vector<1x256xf32>
    %62 = arith.addf %58, %61 : vector<1x256xf32>
    %c2_39 = arith.constant 2 : index
    %c3_40 = arith.constant 3 : index
    %63 = memref.load %arg2[%c2_39, %c3_40] : memref<3x4xf32, #tpu.memory_space<smem>>
    %64 = vector.broadcast %63 : f32 to vector<1x256xf32>
    %65 = arith.mulf %10, %64 : vector<1x256xf32>
    %66 = arith.addf %62, %65 : vector<1x256xf32>
    %c2_41 = arith.constant 2 : index
    %c128_42 = arith.constant 128 : index
    %67 = vector.load %arg5[%c2_41, %c128_42] : memref<3x512xf32, #tpu.memory_space<vmem>>, vector<1x256xf32>
    tpu.vector_store %arg5[%c2_41, %c128_42], %66 {strides = array<i32>} : memref<3x512xf32, #tpu.memory_space<vmem>>, vector<1x256xf32>,
    %68 = tpu.iota {dimensions = array<i32: 1>} : vector<1x256xi32>
    %c16_i32 = arith.constant 16 : i32
    %c0_i32 = arith.constant 0 : i32
    %69 = arith.cmpi eq, %c16_i32, %c0_i32 : i32
    %c1_i32 = arith.constant 1 : i32
    %70 = arith.select %69, %c1_i32, %c16_i32 : i32
    %71 = vector.broadcast %70 : i32 to vector<1x256xi32>
    %72 = arith.remsi %68, %71 : vector<1x256xi32>
    %c0_i32_43 = arith.constant 0 : i32
    %73 = vector.broadcast %c0_i32_43 : i32 to vector<1x256xi32>
    %74 = arith.cmpi ne, %72, %73 : vector<1x256xi32>
    %c0_i32_44 = arith.constant 0 : i32
    %75 = vector.broadcast %c0_i32_44 : i32 to vector<1x256xi32>
    %76 = arith.cmpi slt, %72, %75 : vector<1x256xi32>
    %c0_i32_45 = arith.constant 0 : i32
    %77 = arith.cmpi slt, %70, %c0_i32_45 : i32
    %78 = vector.broadcast %77 : i1 to vector<1x256xi1>
    %79 = vector.broadcast %78 : vector<1x256xi1> to vector<1x256xi1>
    %80 = arith.xori %76, %79 : vector<1x256xi1>
    %81 = arith.andi %80, %74 : vector<1x256xi1>
    %82 = vector.broadcast %70 : i32 to vector<1x256xi32>
    %83 = arith.addi %72, %82 : vector<1x256xi32>
    %84 = arith.select %81, %83, %72 : vector<1x256xi1>, vector<1x256xi32>
    %c0_i32_46 = arith.constant 0 : i32
    %85 = vector.broadcast %c0_i32_46 : i32 to vector<1x256xi32>
    %86 = arith.cmpi sgt, %84, %85 : vector<1x256xi32>
    %87 = arith.extui %86 : vector<1x256xi1> to vector<1x256xi32>
    %88 = arith.sitofp %87 : vector<1x256xi32> to vector<1x256xf32>
    %c15_i32 = arith.constant 15 : i32
    %89 = vector.broadcast %c15_i32 : i32 to vector<1x256xi32>
    %90 = arith.cmpi slt, %84, %89 : vector<1x256xi32>
    %91 = arith.extui %90 : vector<1x256xi1> to vector<1x256xi32>
    %92 = arith.sitofp %91 : vector<1x256xi32> to vector<1x256xf32>
    %c0_47 = arith.constant 0 : index
    %c128_48 = arith.constant 128 : index
    %93 = vector.load %arg5[%c0_47, %c128_48] : memref<3x512xf32, #tpu.memory_space<vmem>>, vector<3x256xf32>
    %c0_49 = arith.constant 0 : index
    %c112 = arith.constant 112 : index
    %94 = vector.load %arg5[%c0_49, %c112] : memref<3x512xf32, #tpu.memory_space<vmem>>, vector<3x256xf32>
    %c0_50 = arith.constant 0 : index
    %c144 = arith.constant 144 : index
    %95 = vector.load %arg5[%c0_50, %c144] : memref<3x512xf32, #tpu.memory_space<vmem>>, vector<3x256xf32>
    %c0_51 = arith.constant 0 : index
    %c127 = arith.constant 127 : index
    %96 = vector.load %arg5[%c0_51, %c127] : memref<3x512xf32, #tpu.memory_space<vmem>>, vector<3x256xf32>
    %97 = vector.broadcast %88 : vector<1x256xf32> to vector<3x256xf32>
    %98 = arith.mulf %96, %97 : vector<3x256xf32>
    %c0_52 = arith.constant 0 : index
    %c129 = arith.constant 129 : index
    %99 = vector.load %arg5[%c0_52, %c129] : memref<3x512xf32, #tpu.memory_space<vmem>>, vector<3x256xf32>
    %100 = vector.broadcast %92 : vector<1x256xf32> to vector<3x256xf32>
    %101 = arith.mulf %99, %100 : vector<3x256xf32>
    %cst_53 = arith.constant 5.000000e+00 : f32
    %102 = vector.broadcast %cst_53 : f32 to vector<3x256xf32>
    %103 = arith.mulf %102, %93 : vector<3x256xf32>
    %104 = arith.subf %103, %94 : vector<3x256xf32>
    %105 = arith.subf %104, %95 : vector<3x256xf32>
    %106 = arith.subf %105, %98 : vector<3x256xf32>
    %107 = arith.subf %106, %101 : vector<3x256xf32>
    %cst_54 = arith.constant dense<0xFF800000> : vector<256xf32>
    %108 = vector.multi_reduction <maximumf>, %107, %cst_54 [0] : vector<3x256xf32> to vector<256xf32>
    %109 = vector.shape_cast %108 : vector<256xf32> to vector<1x256xf32>
    %110 = vector.broadcast %109 : vector<1x256xf32> to vector<3x256xf32>
    %111 = arith.subf %107, %110 : vector<3x256xf32>
    %112 = math.exp %111 : vector<3x256xf32>
    %cst_55 = arith.constant dense<0.000000e+00> : vector<256xf32>
    %113 = vector.multi_reduction <add>, %112, %cst_55 [0] : vector<3x256xf32> to vector<256xf32>
    %114 = vector.shape_cast %113 : vector<256xf32> to vector<1x256xf32>
    %115 = tpu.reciprocal %114 {approx = true} : vector<1x256xf32> -> vector<1x256xf32>
    %116 = vector.broadcast %115 : vector<1x256xf32> to vector<3x256xf32>
    %117 = arith.mulf %112, %116 : vector<3x256xf32>
    %c0_56 = arith.constant 0 : index
    %c0_57 = arith.constant 0 : index
    %c0_58 = arith.constant 0 : index
    %118 = vector.load %arg4[%c0_56, %c0_57, %c0_58] : memref<1x3x256xf32, #tpu.memory_space<vmem>>, vector<1x3x256xf32>
    %119 = vector.shape_cast %118 : vector<1x3x256xf32> to vector<3x256xf32>
    %120 = vector.shape_cast %117 : vector<3x256xf32> to vector<1x3x256xf32>
    tpu.vector_store %arg4[%c0_56, %c0_57, %c0_58], %120 {strides = array<i32>} : memref<1x3x256xf32, #tpu.memory_space<vmem>>, vector<1x3x256xf32>,
    return
  }
  func.func @transform_0(%arg0: i32) -> (i32, i32, i32) {
    %c0_i32 = arith.constant 0 : i32
    %c0_i32_0 = arith.constant 0 : i32
    %c0_i32_1 = arith.constant 0 : i32
    return %arg0, %c0_i32, %c0_i32_0 : i32, i32, i32
  }
  func.func @transform_1(%arg0: i32) -> (i32, i32) {
    %c0_i32 = arith.constant 0 : i32
    %c0_i32_0 = arith.constant 0 : i32
    %c0_i32_1 = arith.constant 0 : i32
    return %c0_i32, %c0_i32_0 : i32, i32
  }
  func.func @transform_2(%arg0: i32) -> i32 {
    %c0_i32 = arith.constant 0 : i32
    %c0_i32_0 = arith.constant 0 : i32
    return %c0_i32 : i32
  }
  func.func @transform_3(%arg0: i32) -> (i32, i32, i32) {
    %c0_i32 = arith.constant 0 : i32
    %c0_i32_0 = arith.constant 0 : i32
    %c0_i32_1 = arith.constant 0 : i32
    return %arg0, %c0_i32, %c0_i32_0 : i32, i32, i32
  }
}

</mosaic_0001>

<bundles_post_ra>
// kernel: out_conv.1
= control target key start
LH: loop header
LB: loop body
LE: loop exit
PB: predicated region body
PF: predicated region fallthrough
CT: control target
= control target key end

     0   :  { %8 = vsyncpa [#allocation4], 0  ;;  %s801_s0 = inlined_call_operand.vmem [shape: f32[2,4,256], index: 0, kind: input, shape index: {}]   ;;  %s802_s1 = inlined_call_operand.vmem [shape: f32[3,4], index: 1, kind: input, shape index: {}]   ;;  %s803_s2 = inlined_call_operand.vmem [shape: f32[3], index: 2, kind: input, shape index: {}]   ;;  %s804_s3 = inlined_call_operand.vmem [shape: f32[2,3,256], index: 3, kind: output, shape index: {}]  }
   0x1   :  { %9 = vsyncpa [#allocation6], 0  ;;  %s667_s12 = smov 0  }
   0x2 LB: > { %s673_s13 = sadd.s32 4294967295, %s638_s12   ;;  %p519_p0 = scmp.ge.s32.totalorder %s638_s12, 1  ;;  %s638_s12 = sphi %s667_s12, %s15_s12  }
   0x3   : > { %p114_p1 = scmp.lt.s32.totalorder %s638_s12, 3  ;;  %s127_s16 = sshll.u32 %s802_s1, 4  ;;  %s128_s16 = int_to_ptr.vmem [resolvable:$true] %s127_s16 }
   0x4   : > { %p805_p3 = scmp.eq.s32.totalorder %s673_s13, 0  ;;  %s138_s20 = sshll.u32 %s803_s2, 4  ;;  %s139_s20 = int_to_ptr.vmem [resolvable:$true] %s138_s20 }
   0x5   : > { %p680_p2 = pnand %p519_p0, %p114_p1  ;;  %s594_s22 = scalar_lea.vmem %s128_s16, 64 }
   0x6   : > { %p595_p6 = scmp.ne.s32.totalorder %s128_s16, %s594_s22  ;;  %p602_p10 = scmp.lt.s32.totalorder %s128_s16, %s128_s16 }
   0x7   : > { %s807_s17 = scalar_select %p680_p2, 1, 0 }
   0x8   : > { %p562_p4 = pneg %p680_p2  ;;  %p603_p11 = scmp.lt.s32.totalorder %s594_s22, %s594_s22 }
   0xa   : > { %p692_p5 = pnand %p805_p3, %p562_p4  ;;  %p604_p12 = por %p603_p11, %p602_p10 }
   0xc   : > { %p596_p7 = pneg %p692_p5 }
   0xe   : > { %p597_p8 = pnand %p596_p7, %p595_p6 }
  0x10   : > { %p598_p9 = pneg %p597_p8 }
  0x12   : > { %p605_p13 = pnand %p604_p12, %p598_p9 }
  0x14   : > { %608 = shalt.err (!%p605_p13)
}
  0x15   : > { %s640_s23 = smov [#allocation3]   ;;  %s609_s24 = scalar_lea.vmem %s139_s20, 16 }
  0x16   : > { %565 = dma.vmem_to_smem (!%p692_p5), %s128_s16, 64, %s640_s23, [#allocation4]  }
  0x17   : > { %p610_p0 = scmp.ne.s32.totalorder %s139_s20, %s609_s24  ;;  %p617_p3 = scmp.lt.s32.totalorder %s139_s20, %s139_s20 }
  0x18   : > { %p618_p2 = scmp.lt.s32.totalorder %s609_s24, %s609_s24 }
  0x19   : > { %p612_p1 = pnand %p610_p0, %p596_p7 }
  0x1a   : > { %p619_p6 = por %p618_p2, %p617_p3 }
  0x1b   : > { %p613_p4 = pneg %p612_p1 }
  0x1d   : > { %p620_p8 = pnand %p619_p6, %p613_p4 }
  0x1f   : > { %623 = shalt.err (!%p620_p8)
}
  0x20   : > { %s641_s25 = smov [#allocation5]   ;;  %p809_p9 = scmp.ne.s32.totalorder %s807_s17, 0 }
  0x21   : > { %568 = dma.vmem_to_smem (!%p692_p5), %s139_s20, 16, %s641_s25, [#allocation6]  }
  0x22   : > { %159 = sbr.rel (%p809_p9) target bundleno = 368 (0x170), region = 32  ;;  %p810_p10 = scmp.eq.s32.totalorder (!%p809_p9), %s673_s13, 0 }
  0x29   : > { %629 = dma.done.wait (%p810_p10), [#allocation4], 64   ;;  %p811_p11 = pmov %p810_p10 }
  0x2a   : > { %p812_p7 = pmov %p810_p10 }
  0x2b   : > { %631 = vsyncadd (%p811_p11), [#allocation4], 4294967232 }
  0x2c   : > { %633 = dma.done.wait (%p812_p7), [#allocation6], 16   ;;  %p813_p2 = pmov %p812_p7 }
  0x2e   : > { %635 = vsyncadd (%p813_p2), [#allocation6], 4294967280 }
  0x2f   : > { %169 = sfence }
  0x30   : > { %s712_s26 = sld [smem:[#allocation3]]  ;;  %v225_v0 = vlaneseq  ;;  %s716_s28 = sld [smem:[#allocation3 + $0x1]]  ;;  %v642_v1 = vmov 0.0   ;;  %vm320_vm5 = vcmask 1039360   ;;  %vm332_vm6 = vcmask 7168  }
  0x31   : > { %s714_s27 = sld [smem:[#allocation5]]  ;;  %198 = vst [vmem:[#allocation2] sm:$0x7] %v642_v1  ;;  %199 = vst [vmem:[#allocation2 + $0xc] sm:$0x7] %v642_v1  ;;  %s718_s29 = sld [smem:[#allocation3 + $0x2]] }
  0x32   : > { %s720_s30 = sld [smem:[#allocation3 + $0x3]]  ;;  %v272_v2 = vand.u32 127, %v225_v0  ;;  %s723_s4 = sld [smem:[#allocation3 + $0x80]]  ;;  %vm227_vm4 = vcmp.lt.s32.totalorder %v225_v0, 256  ;;  %vm347_vm7 = vcmask 1043456   ;;  %vm349_vm8 = vcmask 130048  }
  0x33   : > { %s725_s5 = sld [smem:[#allocation5 + $0x1]]  ;;  %s729_s7 = sld [smem:[#allocation3 + $0x82]]  ;;  %vm362_vm9 = vcmask 916480   ;;  %vm393_vm10 = vcmask 1042432  }
  0x34   : > { %s727_s6 = sld [smem:[#allocation3 + $0x81]]  ;;  %v273_v3 = vadd.s32 128, %v272_v2  ;;  %v278_v4 = vand.u32 15, %v272_v2  ;;  %s731_s8 = sld [smem:[#allocation3 + $0x83]] }
  0x35   : > { %s733_s9 = sld [smem:[#allocation3 + $0x100]]  ;;  %s735_s10 = sld [smem:[#allocation5 + $0x2]] }
  0x36   : > { %s737_s11 = sld [smem:[#allocation3 + $0x101]]  ;;  %v285_v5 = vand.u32 15, %v273_v3  ;;  %vm298_vm0 = vcmp.gt.s32.totalorder %v278_v4, 0  ;;  %s739_s14 = sld [smem:[#allocation3 + $0x102]]  ;;  %vm304_vm1 = vcmp.lt.s32.totalorder %v278_v4, 15  ;;  %v208_v12 = vstv %s712_s26 }
  0x37   : > { %s741_s15 = sld [smem:[#allocation3 + $0x103]]  ;;  %v546_v6 = vsel %vm298_vm0, 1.0, %v642_v1  ;;  %p188_p3 = scmp.lt.s32.totalorder %s673_s13, 1  ;;  %v548_v9 = vsel %vm304_vm1, 1.0, %v642_v1  ;;  %v211_v13 = vstv %s714_s27  ;;  %v214_v14 = vstv %s716_s28 }
  0x38   : > { %vm299_vm2 = vcmp.gt.s32.totalorder %v285_v5, 0  ;;  %vm305_vm3 = vcmp.lt.s32.totalorder %v285_v5, 15  ;;  %v744_v7 = vld [vmem:[#allocation2 + $0xc] sm:$0x7]  ;;  %s643_s16 = smov 112   ;;  %v218_v15 = vstv %s718_s29  ;;  %v232_v16 = vstv %s723_s4  ;;  %s644_s17 = smov 127  }
  0x39   : > { %v547_v8 = vsel %vm299_vm2, 1.0, %v642_v1  ;;  %s815_s13 = smov (!%p188_p3, %s673_s13), 1  ;;  %v549_v11 = vsel %vm305_vm3, 1.0, %v642_v1  ;;  %357 = vrot.lane.b32.xlu1 %v744_v7, %s643_s16  ;;  %v222_v19 = vstv %s720_s30  ;;  %v235_v20 = vstv %s725_s5  ;;  %s645_s22 = smov 1  }
  0x3a   : > { %v316_v10 = vcombine.low %v546_v6, %v547_v8  ;;  %v238_v17 = vstv %s727_s6  ;;  %s552_s18 = sshll.u32 %s815_s13, 3  ;;  %v328_v18 = vcombine.low %v548_v9, %v549_v11  ;;  %v242_v21 = vstv %s729_s7  ;;  %s646_s23 = smov 16  }
  0x3b   : > { %v246_v22 = vstv %s731_s8  ;;  %s192_s21 = scalar_lea.vmem %s801_s0, %s552_s18  ;;  %v252_v23 = vstv %s733_s9  ;;  %v255_v33 = vstv %s735_s10  ;;  %s197_s26 = scalar_lea.vmem %s804_s3, %s552_s18 }
  0x3c   : > { %317 = vrot.lane.b32.xlu0 %v316_v10, %s644_s17  ;;  %v258_v24 = vstv %s737_s11  ;;  %v200_v25 = vld [vmem:[%s192_s21] ss:$4 sm:$0x3]  ;;  %v530_v26 = vld [vmem:[%s192_s21 + $0x1] ss:$4 sm:$0x3] }
  0x3d   : > { %v531_v27 = vld [vmem:[%s192_s21 + $0x2] ss:$4 sm:$0x3]  ;;  %v532_v28 = vld [vmem:[%s192_s21 + $0x3] ss:$4 sm:$0x3]  ;;  %v209_v29 = vmul.f32 %v208_v12, %v200_v25  ;;  %v215_v30 = vmul.f32 %v530_v26, %v214_v14  ;;  %v233_v31 = vmul.f32 %v232_v16, %v200_v25  ;;  %v239_v32 = vmul.f32 %v530_v26, %v238_v17 }
  0x3e   : > { %v262_v34 = vstv %s739_s14  ;;  %v219_v35 = vmul.f32 %v531_v27, %v218_v15  ;;  %v243_v36 = vmul.f32 %v531_v27, %v242_v21  ;;  %v253_v39 = vmul.f32 %v252_v23, %v200_v25 }
  0x3f   : > { %v212_v37 = vadd.f32 %v211_v13, %v209_v29  ;;  %v236_v38 = vadd.f32 %v235_v20, %v233_v31  ;;  %v259_v40 = vmul.f32 %v530_v26, %v258_v24  ;;  %v266_v41 = vstv %s741_s15 }
  0x40   : > { %329 = vrot.lane.b32.xlu0 %v328_v18, %s645_s22  ;;  %v223_v42 = vmul.f32 %v532_v28, %v222_v19  ;;  %v247_v43 = vmul.f32 %v532_v28, %v246_v22  ;;  %v256_v46 = vadd.f32 %v255_v33, %v253_v39  ;;  %v263_v47 = vmul.f32 %v531_v27, %v262_v34 }
  0x41   : > { %v216_v44 = vadd.f32 %v215_v30, %v212_v37  ;;  %v240_v45 = vadd.f32 %v239_v32, %v236_v38  ;;  %v267_v51 = vmul.f32 %v532_v28, %v266_v41 }
  0x42   : > { %v260_v50 = vadd.f32 %v259_v40, %v256_v46 }
  0x43   : > { %v220_v48 = vadd.f32 %v219_v35, %v216_v44  ;;  %v244_v49 = vadd.f32 %v243_v36, %v240_v45 }
  0x44   : > { %v264_v54 = vadd.f32 %v263_v47, %v260_v50 }
  0x45   : > { %v224_v52 = vadd.f32 %v223_v42, %v220_v48  ;;  %v248_v53 = vadd.f32 %v247_v43, %v244_v49 }
  0x46   : > { %v268_v55 = vadd.f32 %v267_v51, %v264_v54 }
  0x47   : > { %230 = vst.msk [vmem:[#allocation2 + $0x4] ss:$4 sm:$0x3] %vm227_vm4, %v224_v52  ;;  %250 = vst.msk [vmem:[#allocation2 + $0x5] ss:$4 sm:$0x3] %vm227_vm4, %v248_v53 }
  0x48   : > { %270 = vst.msk [vmem:[#allocation2 + $0x6] ss:$4 sm:$0x3] %vm227_vm4, %v268_v55 }
  0x4f   : > { %v311_v56 = vld [vmem:[#allocation2] sm:$0x77]  ;;  %v312_v58 = vld [vmem:[#allocation2 + $0x8] sm:$0x7] }
  0x50   : > { %v310_v57 = vld [vmem:[#allocation2 + $0x4] sm:$0x77]  ;;  %341 = vrot.lane.b32.xlu1 %v311_v56, %s646_s23 }
  0x51   : > { %355 = vrot.lane.b32.xlu0 %v310_v57, %s643_s16  ;;  %v338_v15 = vmul.f32 5.0, %v310_v57 }
  0x54   : > { %343 = vrot.lane.b32.xlu1 %v312_v58, %s646_s23 }
  0xab   : > { %v358_v5 = vpop.permute.xlu1 %357 }
  0xac   : > { %v360_v12 = vrot.slane %v358_v5, 4 }
  0xae   : > { %v318_v59 = vpop.permute.xlu0 %317 }
  0xaf   : > { %v319_v60 = vrot.slane %v318_v59, 4 }
  0xb1   : > { %v321_v61 = vsel %vm320_vm5, %v319_v60, %v318_v59  ;;  %v325_v62 = vmul.f32 %v319_v60, %v312_v58 }
  0xb2   : > { %v324_v63 = vmul.f32 %v321_v61, %v311_v56  ;;  %v330_v0 = vpop.permute.xlu0 %329 }
  0xb3   : > { %v331_v1 = vrot.slane %v330_v0, 4  ;;  %370 = vrot.lane.b32.xlu1 %v325_v62, %s645_s22 }
  0xb4   : > { %368 = vrot.lane.b32.xlu0 %v324_v63, %s645_s22 }
  0xb5   : > { %v333_v2 = vsel %vm332_vm6, %v331_v1, %v330_v0  ;;  %v337_v3 = vmul.f32 %v331_v1, %v744_v7 }
  0xb6   : > { %v336_v4 = vmul.f32 %v333_v2, %v310_v57 }
  0xb7   : > { %382 = vrot.lane.b32.xlu1 %v337_v3, %s644_s17 }
  0xb8   : > { %380 = vrot.lane.b32.xlu0 %v336_v4, %s644_s17 }
  0xc2   : > { %v342_v6 = vpop.permute.xlu1 %341 }
  0xc3   : > { %v345_v9 = vrot.slane %v342_v6, 4  ;;  %v356_v11 = vpop.permute.xlu0 %355 }
  0xc4   : > { %v359_v14 = vrot.slane %v356_v11, 4 }
  0xc6   : > { %v344_v8 = vpop.permute.xlu1 %343  ;;  %v361_v7 = vsel %vm347_vm7, %v359_v14, %v360_v12 }
  0xc7   : > { %v346_v10 = vrot.slane %v344_v8, 4  ;;  %v363_v22 = vsel %vm362_vm9, %v356_v11, %v361_v7 }
  0xc9   : > { %v348_v13 = vsel %vm347_vm7, %v345_v9, %v346_v10 }
  0xca   : > { %v350_v16 = vsel %vm349_vm8, %v342_v6, %v348_v13 }
  0xcb   : > { %v352_v20 = vsub.f32 %v338_v15, %v350_v16 }
  0xcd   : > { %v365_v28 = vsub.f32 %v352_v20, %v363_v22 }
 0x125   : > { %v371_v17 = vpop.permute.xlu1 %370 }
 0x126   : > { %v373_v18 = vrot.slane %v371_v17, 4  ;;  %v369_v19 = vpop.permute.xlu0 %368 }
 0x127   : > { %v372_v21 = vrot.slane %v369_v19, 4 }
 0x129   : > { %v374_v23 = vsel %vm347_vm7, %v372_v21, %v373_v18  ;;  %v383_v24 = vpop.permute.xlu1 %382 }
 0x12a   : > { %v375_v25 = vsel %vm332_vm6, %v369_v19, %v374_v23  ;;  %v385_v26 = vrot.slane %v383_v24, 4  ;;  %v381_v27 = vpop.permute.xlu0 %380 }
 0x12b   : > { %v384_v29 = vrot.slane %v381_v27, 4  ;;  %v377_v30 = vsub.f32 %v365_v28, %v375_v25 }
 0x12d   : > { %v386_v31 = vsel %vm347_vm7, %v384_v29, %v385_v26 }
 0x12e   : > { %v387_v32 = vsel %vm320_vm5, %v381_v27, %v386_v31 }
 0x12f   : > { %v389_v33 = vsub.f32 %v377_v30, %v387_v32 }
 0x131   : > { %v391_v34 = vcombine.high %v389_v33, %v389_v33  ;;  %v394_v35 = vsel %vm393_vm10, %v389_v33, -inf }
 0x132   : > { %v395_v36 = vrot.slane %v394_v35, 4 }
 0x133   : > { %v401_v37 = vsel %vm393_vm10, %v391_v34, -inf }
 0x134   : > { %v396_v38 = vmax.f32 %v394_v35, %v395_v36  ;;  %v402_v39 = vrot.slane %v401_v37, 4 }
 0x136   : > { %v397_v40 = vrot.slane %v396_v38, 2  ;;  %v403_v41 = vmax.f32 %v401_v37, %v402_v39 }
 0x138   : > { %v398_v42 = vmax.f32 %v396_v38, %v397_v40  ;;  %v404_v43 = vrot.slane %v403_v41, 2 }
 0x13a   : > { %v399_v44 = vrot.slane %v398_v42, 1  ;;  %v405_v45 = vmax.f32 %v403_v41, %v404_v43 }
 0x13c   : > { %v406_v46 = vrot.slane %v405_v45, 1  ;;  %v400_v47 = vmax.f32 %v398_v42, %v399_v44 }
 0x13e   : > { %v407_v48 = vmax.f32 %v405_v45, %v406_v46 }
 0x140   : > { %v410_v49 = vcombine.low %v400_v47, %v407_v48 }
 0x142   : > { %v412_v50 = vsub.f32 %v389_v33, %v410_v49 }
 0x144   : > { %v413_v51 = vmul.f32 1.442695, %v412_v50 }
 0x146   : > { %588 = vpow2.f32 %v413_v51 }
 0x150   : > { %v589_v52 = vpop.eup %588 }
 0x151   : > { %v416_v53 = vcombine.high %v589_v52, %v589_v52  ;;  %v418_v54 = vsel %vm393_vm10, %v589_v52, 0.0 }
 0x152   : > { %v419_v55 = vrot.slane %v418_v54, 4 }
 0x153   : > { %v425_v56 = vsel %vm393_vm10, %v416_v53, 0.0 }
 0x154   : > { %v420_v57 = vadd.f32 %v419_v55, %v418_v54  ;;  %v426_v58 = vrot.slane %v425_v56, 4 }
 0x156   : > { %v421_v59 = vrot.slane %v420_v57, 2  ;;  %v427_v60 = vadd.f32 %v426_v58, %v425_v56 }
 0x158   : > { %v422_v61 = vadd.f32 %v421_v59, %v420_v57  ;;  %v428_v62 = vrot.slane %v427_v60, 2 }
 0x15a   : > { %v423_v63 = vrot.slane %v422_v61, 1  ;;  %v429_v0 = vadd.f32 %v428_v62, %v427_v60 }
 0x15c   : > { %v424_v1 = vadd.f32 %v423_v63, %v422_v61  ;;  %v430_v2 = vrot.slane %v429_v0, 1 }
 0x15e   : > { %v431_v3 = vadd.f32 %v430_v2, %v429_v0  ;;  %590 = vrcp.f32 %v424_v1 }
 0x160   : > { %592 = vrcp.f32 %v431_v3 }
 0x168   : > { %v591_v4 = vpop.eup %590 }
 0x16a   : > { %v593_v5 = vpop.eup %592 }
 0x16b   : > { %v436_v6 = vcombine.low %v591_v4, %v593_v5 }
 0x16d   : > { %v438_v8 = vmul.f32 %v589_v52, %v436_v6 }
 0x16f   : > { %439 = vst [vmem:[%s197_s26] sm:$0x77] %v438_v8 }
 0x170 PF: > { %s15_s12 = sadd.s32 1, %s638_s12  }
 0x171   : > { %p12_p5 = scmp.ge.s32.totalorder %s15_s12, 4  }
 0x173   :  { %14 = sbr.rel (!%p12_p5) target bundleno = 2 (0x2), region = 77 }
 0x17a   :  { %461 = vsyncpa [#allocation4], 1 }
 0x17b   :  { %463 = vsyncpa [#allocation4 + $0x1], 1 }
 0x17c   :  { %464 = vsyncpa [#allocation6], 1 }

</bundles_post_ra>
